<compile_context>
chip_gen: v6e
topology: v6e:2x2x1
jax: 0.10.0
libtpu: 0.0.40
codegen_flags: <defaults>
</compile_context>

<pallas_src>
import jax
import jax.numpy as jnp
from jax.experimental import pallas as pl
from jax.experimental.pallas import tpu as pltpu


def _round_up(x, m):
    return (x + m - 1) // m * m


# ---------------------------------------------------------------------------
# Kernel: one batch tile of  3x(Linear[+ReLU]) -> softmax -> * act_limit.
# Feature dims are pre-padded to 128-multiples; padded output-bias lanes hold
# -1e30, so they contribute exactly 0 to the softmax without an in-kernel mask.
# ---------------------------------------------------------------------------
def mlp_actor_kernel(act_limit_ref, x_ref, w1_ref, b1_ref, w2_ref, b2_ref,
                     w3_ref, b3_ref, out_ref):
    # x_ref:  (TB, Po)  bf16   observation tile (feature-padded)
    # w*_ref: bf16 padded weights (resident);  b*_ref: f32 padded biases
    # out_ref:(TB, Pa)  act_limit * softmax(logits) in lanes [0, act_dim)
    x = x_ref[...]

    # Layer 1: Linear + ReLU (bf16 MXU, f32 accumulate)
    h1 = jnp.dot(x, w1_ref[...], preferred_element_type=jnp.float32)
    h1 = jnp.maximum(h1 + b1_ref[...], 0.0).astype(jnp.bfloat16)

    # Layer 2: Linear + ReLU
    h2 = jnp.dot(h1, w2_ref[...], preferred_element_type=jnp.float32)
    h2 = jnp.maximum(h2 + b2_ref[...], 0.0).astype(jnp.bfloat16)

    # Output layer: Linear (padded action lanes get -1e30 from the bias)
    logits = jnp.dot(h2, w3_ref[...], preferred_element_type=jnp.float32)
    logits = logits + b3_ref[...]

    # Numerically stable softmax in f32; EUP approx reciprocal; act_limit folded
    # into the single scale multiply.
    m = jnp.max(logits, axis=-1, keepdims=True)
    e = jnp.exp(logits - m)                      # padded lanes underflow to 0
    s = jnp.sum(e, axis=-1, keepdims=True)
    scale = act_limit_ref[0] * pl.reciprocal(s, approx=True)
    out_ref[...] = (e * scale).astype(out_ref.dtype)


# ---------------------------------------------------------------------------
# One-time parameter packing (run at init, NOT per forward call).
# ---------------------------------------------------------------------------
def pack_params(params):
    """Pad each boundary dim to its own 128-multiple, cast weights to bf16,
    and bake the softmax padding mask (-1e30) into the output bias."""
    w1, b1, w2, b2, w3, b3 = params
    obs_dim, h1_dim = w1.shape
    h2_dim, act_dim = w2.shape[1], w3.shape[1]
    po, p1 = _round_up(obs_dim, 128), _round_up(h1_dim, 128)
    p2, pa = _round_up(h2_dim, 128), _round_up(act_dim, 128)

    w1_p = jnp.zeros((po, p1), jnp.bfloat16).at[:obs_dim, :h1_dim].set(
        w1.astype(jnp.bfloat16))
    w2_p = jnp.zeros((p1, p2), jnp.bfloat16).at[:h1_dim, :h2_dim].set(
        w2.astype(jnp.bfloat16))
    w3_p = jnp.zeros((p2, pa), jnp.bfloat16).at[:h2_dim, :act_dim].set(
        w3.astype(jnp.bfloat16))

    b1_p = jnp.zeros((1, p1), jnp.float32).at[0, :h1_dim].set(
        b1.reshape(-1).astype(jnp.float32))
    b2_p = jnp.zeros((1, p2), jnp.float32).at[0, :h2_dim].set(
        b2.reshape(-1).astype(jnp.float32))
    # -1e30 on padded action lanes: exp(logit - max) underflows to exactly 0,
    # so no iota/where mask is needed in the kernel.
    b3_p = jnp.full((1, pa), -1e30, jnp.float32).at[0, :act_dim].set(
        b3.reshape(-1).astype(jnp.float32))

    return (w1_p, b1_p, w2_p, b2_p, w3_p, b3_p), act_dim


def _choose_batch_tile(batch, max_tile):
    """Batch tile: 16-aligned (bf16 sublane packing); >=2 grid steps when the
    batch allows (v7x has 2 TensorCores) while keeping padding waste small."""
    b = _round_up(batch, 16)
    if b <= 16:
        return b
    return min(_round_up(max_tile, 16), _round_up((b + 1) // 2, 16))


# ---------------------------------------------------------------------------
# Forward wrapper.
# ---------------------------------------------------------------------------
def mlp_actor_forward(obs, packed_params, act_dim, act_limit, *,
                      batch_tile=512, out_dtype=jnp.float32):
    """Batch-tiled Pallas call. Returns (batch, act_dim) actions."""
    w1_p, b1_p, w2_p, b2_p, w3_p, b3_p = packed_params
    batch, obs_dim = obs.shape
    po, p1 = w1_p.shape
    p2, pa = w3_p.shape

    tb = _choose_batch_tile(batch, batch_tile)
    b_pad = _round_up(batch, tb)
    grid = (b_pad // tb,)

    # Stream obs in bf16 (the only batch-scaled input).
    if (batch, obs_dim) == (b_pad, po):
        obs_p = obs.astype(jnp.bfloat16)
    else:
        obs_p = jnp.zeros((b_pad, po), jnp.bfloat16).at[:batch, :obs_dim].set(
            obs.astype(jnp.bfloat16))

    act_limit_arr = jnp.asarray([act_limit], jnp.float32)

    # Explicit scoped-VMEM budget: params (x2 = headroom for the fallback
    # double-buffered path), double-buffered obs/out tiles, temp slack.
    param_bytes = (2 * (w1_p.size + w2_p.size + w3_p.size)
                   + 4 * (b1_p.size + b2_p.size + b3_p.size))
    io_bytes = 2 * tb * po * 2 + 2 * tb * pa * 4
    temp_bytes = 8 * tb * max(p1, p2, pa) * 4
    vmem_limit = int(min(max(2 * param_bytes + io_bytes + temp_bytes
                             + (4 << 20), 32 << 20), 64 << 20))

    flops = 2 * b_pad * (po * p1 + p1 * p2 + p2 * pa)
    out_itemsize = jnp.dtype(out_dtype).itemsize
    bytes_accessed = int(obs_p.size * 2 + param_bytes + b_pad * pa * out_itemsize)

    def resident(shape, single_buffered):
        if single_buffered:
            return pl.BlockSpec(shape, lambda i: (0, 0),
                                pipeline_mode=pl.Buffered(buffer_count=1))
        return pl.BlockSpec(shape, lambda i: (0, 0))

    def run(single_buffer_params):
        return pl.pallas_call(
            mlp_actor_kernel,
            grid=grid,
            out_shape=jax.ShapeDtypeStruct((b_pad, pa), out_dtype),
            in_specs=[
                pl.BlockSpec(memory_space=pltpu.MemorySpace.SMEM),  # act_limit
                pl.BlockSpec((tb, po), lambda i: (i, 0)),           # obs tile
                resident((po, p1), single_buffer_params),           # W1
                resident((1, p1), single_buffer_params),            # b1
                resident((p1, p2), single_buffer_params),           # W2
                resident((1, p2), single_buffer_params),            # b2
                resident((p2, pa), single_buffer_params),           # W3
                resident((1, pa), single_buffer_params),            # b3 (+mask)
            ],
            out_specs=pl.BlockSpec((tb, pa), lambda i: (i, 0)),
            compiler_params=pltpu.CompilerParams(
                dimension_semantics=("parallel",),
                vmem_limit_bytes=vmem_limit),
            cost_estimate=pl.CostEstimate(
                flops=flops,
                transcendentals=b_pad * pa,
                bytes_accessed=bytes_accessed),
        )(act_limit_arr, obs_p, w1_p, b1_p, w2_p, b2_p, w3_p, b3_p)

    try:
        out_p = run(True)
    except Exception:
        # Fallback for jax builds without pipeline_mode / Buffered(1) support on
        # resident blocks; only costs extra (idle) double buffers of the params.
        out_p = run(False)

    return out_p[:batch, :act_dim]


# ---------------------------------------------------------------------------
# PyTorch-Linear-style init + pure-JAX reference.
# ---------------------------------------------------------------------------
def init_params(key, sizes):
    """U(-1/sqrt(fan_in), 1/sqrt(fan_in)); weights (in, out), biases (1, out)."""
    params = []
    for fan_in, fan_out in zip(sizes[:-1], sizes[1:]):
        key, kw, kb = jax.random.split(key, 3)
        bound = 1.0 / jnp.sqrt(float(fan_in))
        w = jax.random.uniform(kw, (fan_in, fan_out), jnp.float32, -bound, bound)
        b = jax.random.uniform(kb, (1, fan_out), jnp.float32, -bound, bound)
        params += [w, b]
    return params


def reference_forward(obs, params, act_limit):
    w1, b1, w2, b2, w3, b3 = params
    h1 = jnp.maximum(obs @ w1 + b1, 0.0)
    h2 = jnp.maximum(h1 @ w2 + b2, 0.0)
    logits = h2 @ w3 + b3
    return act_limit * jax.nn.softmax(logits, axis=-1)


if __name__ == "__main__":
    # Small shapes consistent with MLPActor(obs_dim, act_dim, hidden_sizes, ReLU, act_limit)
    batch, obs_dim, act_dim = 8, 16, 8
    hidden_sizes = (32, 32)
    act_limit = 2.0

    key = jax.random.PRNGKey(0)
    key, k_obs = jax.random.split(key)
    obs = jax.random.normal(k_obs, (batch, obs_dim), jnp.float32)

    sizes = [obs_dim] + list(hidden_sizes) + [act_dim]
    params = init_params(key, sizes)

    # Pack/pad parameters ONCE at init (hoisted out of the forward path).
    packed_params, packed_act_dim = pack_params(params)

    out = mlp_actor_forward(obs, packed_params, packed_act_dim, act_limit)
    out = jax.block_until_ready(out)

    ref = reference_forward(obs, params, act_limit)
    assert out.shape == (batch, act_dim)
    # bf16 obs/weights on the MXU + approx reciprocal vs. pure-f32 reference.
    assert jnp.allclose(out, ref, atol=3e-2, rtol=3e-2)
    # Rows of act_limit * softmax must sum to (approximately) act_limit.
    assert jnp.allclose(out.sum(axis=-1), act_limit, atol=1e-2)

    print("KERNEL_OK")
</pallas_src>

<mosaic_0001>
module attributes {stable_mosaic.version = 11 : i64} {
  func.func @mlp_actor_kernel(%arg0: i32, %arg1: memref<1xf32, #tpu.memory_space<smem>>, %arg2: memref<16x128xbf16, #tpu.memory_space<vmem>>, %arg3: memref<128x128xbf16, #tpu.memory_space<vmem>>, %arg4: memref<1x128xf32, #tpu.memory_space<vmem>>, %arg5: memref<128x128xbf16, #tpu.memory_space<vmem>>, %arg6: memref<1x128xf32, #tpu.memory_space<vmem>>, %arg7: memref<128x128xbf16, #tpu.memory_space<vmem>>, %arg8: memref<1x128xf32, #tpu.memory_space<vmem>>, %arg9: memref<16x128xf32, #tpu.memory_space<vmem>>) attributes {dimension_semantics = [#tpu.dimension_semantics<parallel>], iteration_bounds = array<i64: 1>, scalar_prefetch = 0 : i64, scratch_operands = 0 : i64, tpu.core_type = #tpu.core_type<tc>, window_params = [{transform_indices = @transform_0, window_bounds = array<i64: 1>}, {transform_indices = @transform_1, window_bounds = array<i64: 16, 128>}, {pipeline_mode = #tpu.pipeline_mode<synchronous>, transform_indices = @transform_2, window_bounds = array<i64: 128, 128>}, {pipeline_mode = #tpu.pipeline_mode<synchronous>, transform_indices = @transform_3, window_bounds = array<i64: 1, 128>}, {pipeline_mode = #tpu.pipeline_mode<synchronous>, transform_indices = @transform_4, window_bounds = array<i64: 128, 128>}, {pipeline_mode = #tpu.pipeline_mode<synchronous>, transform_indices = @transform_5, window_bounds = array<i64: 1, 128>}, {pipeline_mode = #tpu.pipeline_mode<synchronous>, transform_indices = @transform_6, window_bounds = array<i64: 128, 128>}, {pipeline_mode = #tpu.pipeline_mode<synchronous>, transform_indices = @transform_7, window_bounds = array<i64: 1, 128>}, {transform_indices = @transform_8, window_bounds = array<i64: 16, 128>}]} {
    %c0 = arith.constant 0 : index
    %c0_0 = arith.constant 0 : index
    %0 = vector.load %arg2[%c0, %c0_0] : memref<16x128xbf16, #tpu.memory_space<vmem>>, vector<16x128xbf16>
    %c0_1 = arith.constant 0 : index
    %c0_2 = arith.constant 0 : index
    %1 = vector.load %arg3[%c0_1, %c0_2] : memref<128x128xbf16, #tpu.memory_space<vmem>>, vector<128x128xbf16>
    %cst = arith.constant dense<0.000000e+00> : vector<16x128xf32>
    %2 = tpu.matmul %0, %1, %cst {dimension_numbers = #tpu.dot_dimension_numbers<[1], [0], [0], [1], [0, 0, 1, 1], [], []>} : vector<16x128xbf16>, vector<128x128xbf16>, vector<16x128xf32> -> vector<16x128xf32>
    %c0_3 = arith.constant 0 : index
    %c0_4 = arith.constant 0 : index
    %3 = vector.load %arg4[%c0_3, %c0_4] : memref<1x128xf32, #tpu.memory_space<vmem>>, vector<1x128xf32>
    %4 = vector.broadcast %3 : vector<1x128xf32> to vector<16x128xf32>
    %5 = arith.addf %2, %4 : vector<16x128xf32>
    %cst_5 = arith.constant 0.000000e+00 : f32
    %6 = vector.broadcast %cst_5 : f32 to vector<16x128xf32>
    %7 = arith.maximumf %5, %6 : vector<16x128xf32>
    %8 = arith.truncf %7 : vector<16x128xf32> to vector<16x128xbf16>
    %c0_6 = arith.constant 0 : index
    %c0_7 = arith.constant 0 : index
    %9 = vector.load %arg5[%c0_6, %c0_7] : memref<128x128xbf16, #tpu.memory_space<vmem>>, vector<128x128xbf16>
    %cst_8 = arith.constant dense<0.000000e+00> : vector<16x128xf32>
    %10 = tpu.matmul %8, %9, %cst_8 {dimension_numbers = #tpu.dot_dimension_numbers<[1], [0], [0], [1], [0, 0, 1, 1], [], []>} : vector<16x128xbf16>, vector<128x128xbf16>, vector<16x128xf32> -> vector<16x128xf32>
    %c0_9 = arith.constant 0 : index
    %c0_10 = arith.constant 0 : index
    %11 = vector.load %arg6[%c0_9, %c0_10] : memref<1x128xf32, #tpu.memory_space<vmem>>, vector<1x128xf32>
    %12 = vector.broadcast %11 : vector<1x128xf32> to vector<16x128xf32>
    %13 = arith.addf %10, %12 : vector<16x128xf32>
    %cst_11 = arith.constant 0.000000e+00 : f32
    %14 = vector.broadcast %cst_11 : f32 to vector<16x128xf32>
    %15 = arith.maximumf %13, %14 : vector<16x128xf32>
    %16 = arith.truncf %15 : vector<16x128xf32> to vector<16x128xbf16>
    %c0_12 = arith.constant 0 : index
    %c0_13 = arith.constant 0 : index
    %17 = vector.load %arg7[%c0_12, %c0_13] : memref<128x128xbf16, #tpu.memory_space<vmem>>, vector<128x128xbf16>
    %cst_14 = arith.constant dense<0.000000e+00> : vector<16x128xf32>
    %18 = tpu.matmul %16, %17, %cst_14 {dimension_numbers = #tpu.dot_dimension_numbers<[1], [0], [0], [1], [0, 0, 1, 1], [], []>} : vector<16x128xbf16>, vector<128x128xbf16>, vector<16x128xf32> -> vector<16x128xf32>
    %c0_15 = arith.constant 0 : index
    %c0_16 = arith.constant 0 : index
    %19 = vector.load %arg8[%c0_15, %c0_16] : memref<1x128xf32, #tpu.memory_space<vmem>>, vector<1x128xf32>
    %20 = vector.broadcast %19 : vector<1x128xf32> to vector<16x128xf32>
    %21 = arith.addf %18, %20 : vector<16x128xf32>
    %cst_17 = arith.constant dense<0xFF800000> : vector<16xf32>
    %22 = vector.multi_reduction <maximumf>, %21, %cst_17 [1] : vector<16x128xf32> to vector<16xf32>
    %23 = vector.shape_cast %22 : vector<16xf32> to vector<16x1xf32>
    %24 = vector.broadcast %23 : vector<16x1xf32> to vector<16x128xf32>
    %25 = arith.subf %21, %24 : vector<16x128xf32>
    %26 = math.exp %25 : vector<16x128xf32>
    %cst_18 = arith.constant dense<0.000000e+00> : vector<16xf32>
    %27 = vector.multi_reduction <add>, %26, %cst_18 [1] : vector<16x128xf32> to vector<16xf32>
    %28 = vector.shape_cast %27 : vector<16xf32> to vector<16x1xf32>
    %c0_19 = arith.constant 0 : index
    %29 = memref.load %arg1[%c0_19] : memref<1xf32, #tpu.memory_space<smem>>
    %30 = tpu.reciprocal %28 {approx = true} : vector<16x1xf32> -> vector<16x1xf32>
    %31 = vector.broadcast %29 : f32 to vector<16x1xf32>
    %32 = arith.mulf %31, %30 : vector<16x1xf32>
    %33 = vector.broadcast %32 : vector<16x1xf32> to vector<16x128xf32>
    %34 = arith.mulf %26, %33 : vector<16x128xf32>
    %c0_20 = arith.constant 0 : index
    %c0_21 = arith.constant 0 : index
    %35 = vector.load %arg9[%c0_20, %c0_21] : memref<16x128xf32, #tpu.memory_space<vmem>>, vector<16x128xf32>
    tpu.vector_store %arg9[%c0_20, %c0_21], %34 {strides = array<i32>} : memref<16x128xf32, #tpu.memory_space<vmem>>, vector<16x128xf32>,
    return
  }
  func.func @transform_0(%arg0: i32) -> i32 {
    %c0_i32 = arith.constant 0 : i32
    %c0_i32_0 = arith.constant 0 : i32
    return %c0_i32 : i32
  }
  func.func @transform_1(%arg0: i32) -> (i32, i32) {
    %c0_i32 = arith.constant 0 : i32
    %c0_i32_0 = arith.constant 0 : i32
    return %arg0, %c0_i32 : i32, i32
  }
  func.func @transform_2(%arg0: i32) -> (i32, i32) {
    %c0_i32 = arith.constant 0 : i32
    %c0_i32_0 = arith.constant 0 : i32
    %c0_i32_1 = arith.constant 0 : i32
    return %c0_i32, %c0_i32_0 : i32, i32
  }
  func.func @transform_3(%arg0: i32) -> (i32, i32) {
    %c0_i32 = arith.constant 0 : i32
    %c0_i32_0 = arith.constant 0 : i32
    %c0_i32_1 = arith.constant 0 : i32
    return %c0_i32, %c0_i32_0 : i32, i32
  }
  func.func @transform_4(%arg0: i32) -> (i32, i32) {
    %c0_i32 = arith.constant 0 : i32
    %c0_i32_0 = arith.constant 0 : i32
    %c0_i32_1 = arith.constant 0 : i32
    return %c0_i32, %c0_i32_0 : i32, i32
  }
  func.func @transform_5(%arg0: i32) -> (i32, i32) {
    %c0_i32 = arith.constant 0 : i32
    %c0_i32_0 = arith.constant 0 : i32
    %c0_i32_1 = arith.constant 0 : i32
    return %c0_i32, %c0_i32_0 : i32, i32
  }
  func.func @transform_6(%arg0: i32) -> (i32, i32) {
    %c0_i32 = arith.constant 0 : i32
    %c0_i32_0 = arith.constant 0 : i32
    %c0_i32_1 = arith.constant 0 : i32
    return %c0_i32, %c0_i32_0 : i32, i32
  }
  func.func @transform_7(%arg0: i32) -> (i32, i32) {
    %c0_i32 = arith.constant 0 : i32
    %c0_i32_0 = arith.constant 0 : i32
    %c0_i32_1 = arith.constant 0 : i32
    return %c0_i32, %c0_i32_0 : i32, i32
  }
  func.func @transform_8(%arg0: i32) -> (i32, i32) {
    %c0_i32 = arith.constant 0 : i32
    %c0_i32_0 = arith.constant 0 : i32
    return %arg0, %c0_i32 : i32, i32
  }
}

module attributes {stable_mosaic.version = 11 : i64} {
  func.func @mlp_actor_kernel(%arg0: i32, %arg1: memref<1xf32, #tpu.memory_space<smem>>, %arg2: memref<16x128xbf16, #tpu.memory_space<vmem>>, %arg3: memref<128x128xbf16, #tpu.memory_space<vmem>>, %arg4: memref<1x128xf32, #tpu.memory_space<vmem>>, %arg5: memref<128x128xbf16, #tpu.memory_space<vmem>>, %arg6: memref<1x128xf32, #tpu.memory_space<vmem>>, %arg7: memref<128x128xbf16, #tpu.memory_space<vmem>>, %arg8: memref<1x128xf32, #tpu.memory_space<vmem>>, %arg9: memref<16x128xf32, #tpu.memory_space<vmem>>) attributes {dimension_semantics = [#tpu.dimension_semantics<parallel>], iteration_bounds = array<i64: 1>, scalar_prefetch = 0 : i64, scratch_operands = 0 : i64, tpu.core_type = #tpu.core_type<tc>, window_params = [{transform_indices = @transform_0, window_bounds = array<i64: 1>}, {transform_indices = @transform_1, window_bounds = array<i64: 16, 128>}, {pipeline_mode = #tpu.pipeline_mode<synchronous>, transform_indices = @transform_2, window_bounds = array<i64: 128, 128>}, {pipeline_mode = #tpu.pipeline_mode<synchronous>, transform_indices = @transform_3, window_bounds = array<i64: 1, 128>}, {pipeline_mode = #tpu.pipeline_mode<synchronous>, transform_indices = @transform_4, window_bounds = array<i64: 128, 128>}, {pipeline_mode = #tpu.pipeline_mode<synchronous>, transform_indices = @transform_5, window_bounds = array<i64: 1, 128>}, {pipeline_mode = #tpu.pipeline_mode<synchronous>, transform_indices = @transform_6, window_bounds = array<i64: 128, 128>}, {pipeline_mode = #tpu.pipeline_mode<synchronous>, transform_indices = @transform_7, window_bounds = array<i64: 1, 128>}, {transform_indices = @transform_8, window_bounds = array<i64: 16, 128>}]} {
    %c0 = arith.constant 0 : index
    %c0_0 = arith.constant 0 : index
    %0 = vector.load %arg2[%c0, %c0_0] : memref<16x128xbf16, #tpu.memory_space<vmem>>, vector<16x128xbf16>
    %c0_1 = arith.constant 0 : index
    %c0_2 = arith.constant 0 : index
    %1 = vector.load %arg3[%c0_1, %c0_2] : memref<128x128xbf16, #tpu.memory_space<vmem>>, vector<128x128xbf16>
    %cst = arith.constant dense<0.000000e+00> : vector<16x128xf32>
    %2 = tpu.matmul %0, %1, %cst {dimension_numbers = #tpu.dot_dimension_numbers<[1], [0], [0], [1], [0, 0, 1, 1], [], []>} : vector<16x128xbf16>, vector<128x128xbf16>, vector<16x128xf32> -> vector<16x128xf32>
    %c0_3 = arith.constant 0 : index
    %c0_4 = arith.constant 0 : index
    %3 = vector.load %arg4[%c0_3, %c0_4] : memref<1x128xf32, #tpu.memory_space<vmem>>, vector<1x128xf32>
    %4 = vector.broadcast %3 : vector<1x128xf32> to vector<16x128xf32>
    %5 = arith.addf %2, %4 : vector<16x128xf32>
    %cst_5 = arith.constant 0.000000e+00 : f32
    %6 = vector.broadcast %cst_5 : f32 to vector<16x128xf32>
    %7 = arith.maximumf %5, %6 : vector<16x128xf32>
    %8 = arith.truncf %7 : vector<16x128xf32> to vector<16x128xbf16>
    %c0_6 = arith.constant 0 : index
    %c0_7 = arith.constant 0 : index
    %9 = vector.load %arg5[%c0_6, %c0_7] : memref<128x128xbf16, #tpu.memory_space<vmem>>, vector<128x128xbf16>
    %cst_8 = arith.constant dense<0.000000e+00> : vector<16x128xf32>
    %10 = tpu.matmul %8, %9, %cst_8 {dimension_numbers = #tpu.dot_dimension_numbers<[1], [0], [0], [1], [0, 0, 1, 1], [], []>} : vector<16x128xbf16>, vector<128x128xbf16>, vector<16x128xf32> -> vector<16x128xf32>
    %c0_9 = arith.constant 0 : index
    %c0_10 = arith.constant 0 : index
    %11 = vector.load %arg6[%c0_9, %c0_10] : memref<1x128xf32, #tpu.memory_space<vmem>>, vector<1x128xf32>
    %12 = vector.broadcast %11 : vector<1x128xf32> to vector<16x128xf32>
    %13 = arith.addf %10, %12 : vector<16x128xf32>
    %cst_11 = arith.constant 0.000000e+00 : f32
    %14 = vector.broadcast %cst_11 : f32 to vector<16x128xf32>
    %15 = arith.maximumf %13, %14 : vector<16x128xf32>
    %16 = arith.truncf %15 : vector<16x128xf32> to vector<16x128xbf16>
    %c0_12 = arith.constant 0 : index
    %c0_13 = arith.constant 0 : index
    %17 = vector.load %arg7[%c0_12, %c0_13] : memref<128x128xbf16, #tpu.memory_space<vmem>>, vector<128x128xbf16>
    %cst_14 = arith.constant dense<0.000000e+00> : vector<16x128xf32>
    %18 = tpu.matmul %16, %17, %cst_14 {dimension_numbers = #tpu.dot_dimension_numbers<[1], [0], [0], [1], [0, 0, 1, 1], [], []>} : vector<16x128xbf16>, vector<128x128xbf16>, vector<16x128xf32> -> vector<16x128xf32>
    %c0_15 = arith.constant 0 : index
    %c0_16 = arith.constant 0 : index
    %19 = vector.load %arg8[%c0_15, %c0_16] : memref<1x128xf32, #tpu.memory_space<vmem>>, vector<1x128xf32>
    %20 = vector.broadcast %19 : vector<1x128xf32> to vector<16x128xf32>
    %21 = arith.addf %18, %20 : vector<16x128xf32>
    %cst_17 = arith.constant dense<0xFF800000> : vector<16xf32>
    %22 = vector.multi_reduction <maximumf>, %21, %cst_17 [1] : vector<16x128xf32> to vector<16xf32>
    %23 = vector.shape_cast %22 : vector<16xf32> to vector<16x1xf32>
    %24 = vector.broadcast %23 : vector<16x1xf32> to vector<16x128xf32>
    %25 = arith.subf %21, %24 : vector<16x128xf32>
    %26 = math.exp %25 : vector<16x128xf32>
    %cst_18 = arith.constant dense<0.000000e+00> : vector<16xf32>
    %27 = vector.multi_reduction <add>, %26, %cst_18 [1] : vector<16x128xf32> to vector<16xf32>
    %28 = vector.shape_cast %27 : vector<16xf32> to vector<16x1xf32>
    %c0_19 = arith.constant 0 : index
    %29 = memref.load %arg1[%c0_19] : memref<1xf32, #tpu.memory_space<smem>>
    %30 = tpu.reciprocal %28 {approx = true} : vector<16x1xf32> -> vector<16x1xf32>
    %31 = vector.broadcast %29 : f32 to vector<16x1xf32>
    %32 = arith.mulf %31, %30 : vector<16x1xf32>
    %33 = vector.broadcast %32 : vector<16x1xf32> to vector<16x128xf32>
    %34 = arith.mulf %26, %33 : vector<16x128xf32>
    %c0_20 = arith.constant 0 : index
    %c0_21 = arith.constant 0 : index
    %35 = vector.load %arg9[%c0_20, %c0_21] : memref<16x128xf32, #tpu.memory_space<vmem>>, vector<16x128xf32>
    tpu.vector_store %arg9[%c0_20, %c0_21], %34 {strides = array<i32>} : memref<16x128xf32, #tpu.memory_space<vmem>>, vector<16x128xf32>,
    return
  }
  func.func @transform_0(%arg0: i32) -> i32 {
    %c0_i32 = arith.constant 0 : i32
    %c0_i32_0 = arith.constant 0 : i32
    return %c0_i32 : i32
  }
  func.func @transform_1(%arg0: i32) -> (i32, i32) {
    %c0_i32 = arith.constant 0 : i32
    %c0_i32_0 = arith.constant 0 : i32
    return %arg0, %c0_i32 : i32, i32
  }
  func.func @transform_2(%arg0: i32) -> (i32, i32) {
    %c0_i32 = arith.constant 0 : i32
    %c0_i32_0 = arith.constant 0 : i32
    %c0_i32_1 = arith.constant 0 : i32
    return %c0_i32, %c0_i32_0 : i32, i32
  }
  func.func @transform_3(%arg0: i32) -> (i32, i32) {
    %c0_i32 = arith.constant 0 : i32
    %c0_i32_0 = arith.constant 0 : i32
    %c0_i32_1 = arith.constant 0 : i32
    return %c0_i32, %c0_i32_0 : i32, i32
  }
  func.func @transform_4(%arg0: i32) -> (i32, i32) {
    %c0_i32 = arith.constant 0 : i32
    %c0_i32_0 = arith.constant 0 : i32
    %c0_i32_1 = arith.constant 0 : i32
    return %c0_i32, %c0_i32_0 : i32, i32
  }
  func.func @transform_5(%arg0: i32) -> (i32, i32) {
    %c0_i32 = arith.constant 0 : i32
    %c0_i32_0 = arith.constant 0 : i32
    %c0_i32_1 = arith.constant 0 : i32
    return %c0_i32, %c0_i32_0 : i32, i32
  }
  func.func @transform_6(%arg0: i32) -> (i32, i32) {
    %c0_i32 = arith.constant 0 : i32
    %c0_i32_0 = arith.constant 0 : i32
    %c0_i32_1 = arith.constant 0 : i32
    return %c0_i32, %c0_i32_0 : i32, i32
  }
  func.func @transform_7(%arg0: i32) -> (i32, i32) {
    %c0_i32 = arith.constant 0 : i32
    %c0_i32_0 = arith.constant 0 : i32
    %c0_i32_1 = arith.constant 0 : i32
    return %c0_i32, %c0_i32_0 : i32, i32
  }
  func.func @transform_8(%arg0: i32) -> (i32, i32) {
    %c0_i32 = arith.constant 0 : i32
    %c0_i32_0 = arith.constant 0 : i32
    return %arg0, %c0_i32 : i32, i32
  }
}

</mosaic_0001>

<bundles_post_ra>
// kernel: tpu_custom_call.1
= control target key start
LH: loop header
LB: loop body
LE: loop exit
PB: predicated region body
PF: predicated region fallthrough
CT: control target
= control target key end

     0   :  { %14 = vsyncpa [#allocation4], 0  ;;  %s872_s0 = inlined_call_operand.<no memory space> [shape: f32[1], index: 0, kind: input, shape index: {}]   ;;  %s873_s1 = inlined_call_operand.hbm [shape: bf16[16,128], index: 1, kind: input, shape index: {}]   ;;  %s874_s2 = inlined_call_operand.hbm [shape: bf16[128,128], index: 2, kind: input, shape index: {}]   ;;  %s875_s3 = inlined_call_operand.vmem [shape: f32[1,128], index: 3, kind: input, shape index: {}]   ;;  %s876_s4 = inlined_call_operand.hbm [shape: bf16[128,128], index: 4, kind: input, shape index: {}]   ;;  %s877_s5 = inlined_call_operand.vmem [shape: f32[1,128], index: 5, kind: input, shape index: {}]   ;;  %s878_s6 = inlined_call_operand.hbm [shape: bf16[128,128], index: 6, kind: input, shape index: {}]   ;;  %s879_s7 = inlined_call_operand.vmem [shape: f32[1,128], index: 7, kind: input, shape index: {}]   ;;  %s880_s8 = inlined_call_operand.hbm [shape: f32[16,128], index: 8, kind: output, shape index: {}]  }
   0x1   :  { %15 = vsyncpa [#allocation7], 0 }
   0x2   :  { %16 = vsyncpa [#allocation10], 0 }
   0x3   :  { %17 = vsyncpa [#allocation5], 0  ;;  %s747_s27 = smov [#allocation6]   ;;  %s748_s29 = smov [#allocation3]  }
   0x4   :  { %s37_s28 = sshll.u32 %s747_s27, 4  ;;  %s25_s30 = sshll.u32 %s748_s29, 4  ;;  %s38_s28 = int_to_ptr.vmem [resolvable:$true] %s37_s28  ;;  %s26_s30 = int_to_ptr.vmem [resolvable:$true] %s25_s30 }
   0x5   :  { %s647_s9 = scalar_lea.vmem %s38_s28, 1024  ;;  %p652_p1 = scmp.lt.s32.totalorder %s38_s28, %s38_s28 }
   0x6   :  { %p648_p0 = scmp.ne.s32.totalorder %s38_s28, %s647_s9  ;;  %p653_p2 = scmp.lt.s32.totalorder %s647_s9, %s647_s9 }
   0x8   :  { %p654_p3 = por %p653_p2, %p652_p1 }
   0xa   :  { %p655_p4 = pnand %p654_p3, %p648_p0 }
   0xc   :  { %658 = shalt.err (!%p655_p4)
}
   0xd   :  { %s749_s10 = smov 64   ;;  %s750_s11 = smov 4  }
   0xe   :  { %43 = dma.hbm_to_vmem [thread:$0]  %s874_s2, 1024, %s38_s28, [#allocation7], %s749_s10, %s749_s10, %s750_s11  }
   0xf   :  { %s667_s14 = scalar_lea.vmem %s26_s30, 128  ;;  %p672_p6 = scmp.lt.s32.totalorder %s26_s30, %s26_s30 }
  0x10   :  { %p668_p5 = scmp.ne.s32.totalorder %s26_s30, %s667_s14  ;;  %p673_p7 = scmp.lt.s32.totalorder %s667_s14, %s667_s14 }
  0x12   :  { %p674_p8 = por %p673_p7, %p672_p6 }
  0x14   :  { %p675_p9 = pnand %p674_p8, %p668_p5 }
  0x16   :  { %678 = shalt.err (!%p675_p9)
}
  0x17   :  { %31 = dma.hbm_to_vmem [thread:$0]  %s873_s1, 128, %s26_s30, [#allocation4], %s749_s10, %s749_s10, %s750_s11  }
  0x18   :  { %s751_s17 = smov [#allocation8]   ;;  %s752_s19 = smov [#allocation9]  }
  0x19   :  { %s51_s18 = sshll.u32 %s751_s17, 4  ;;  %s65_s20 = sshll.u32 %s752_s19, 4  ;;  %s52_s18 = int_to_ptr.vmem [resolvable:$true] %s51_s18  ;;  %s66_s20 = int_to_ptr.vmem [resolvable:$true] %s65_s20 }
  0x1a   :  { %s687_s2 = scalar_lea.vmem %s52_s18, 1024  ;;  %p692_p11 = scmp.lt.s32.totalorder %s52_s18, %s52_s18 }
  0x1b   :  { %p688_p10 = scmp.ne.s32.totalorder %s52_s18, %s687_s2  ;;  %p693_p12 = scmp.lt.s32.totalorder %s687_s2, %s687_s2 }
  0x1d   :  { %p694_p13 = por %p693_p12, %p692_p11 }
  0x1f   :  { %p695_p0 = pnand %p694_p13, %p688_p10 }
  0x21   :  { %698 = shalt.err (!%p695_p0)
}
  0x22   :  { %57 = dma.hbm_to_vmem [thread:$0]  %s876_s4, 1024, %s52_s18, [#allocation7], %s749_s10, %s749_s10, %s750_s11  }
  0x23   :  { %s707_s1 = scalar_lea.vmem %s66_s20, 1024  ;;  %p712_p2 = scmp.lt.s32.totalorder %s66_s20, %s66_s20 }
  0x24   :  { %p708_p1 = scmp.ne.s32.totalorder %s66_s20, %s707_s1  ;;  %p713_p3 = scmp.lt.s32.totalorder %s707_s1, %s707_s1 }
  0x26   :  { %p714_p4 = por %p713_p3, %p712_p2 }
  0x28   :  { %p715_p5 = pnand %p714_p4, %p708_p1 }
  0x2a   :  { %718 = shalt.err (!%p715_p5)
}
  0x2b   :  { %71 = dma.hbm_to_vmem [thread:$0]  %s878_s6, 1024, %s66_s20, [#allocation10], %s749_s10, %s749_s10, %s750_s11  }
  0x2c   :  { %739 = dma.done.wait [#allocation4], 128  }
  0x2d   :  { %740 = vsyncadd [#allocation4], 4294967168 }
  0x2e   :  { %741 = dma.done.wait [#allocation7], 2048  }
  0x2f   :  { %742 = vsyncadd [#allocation7], 4294965248 }
  0x30   :  { %743 = dma.done.wait [#allocation10], 1024  }
  0x31   :  { %744 = vsyncadd [#allocation10], 4294966272  ;;  %v753_v0 = vmov 0.0   ;;  %vm754_vm0 = vmmov 0   ;;  %v606_v1 = vld [vmem:[#allocation6 + $0x38] sm:$0xff]   ;;  %v607_v2 = vld [vmem:[#allocation6 + $0x30] sm:$0xff]   ;;  %v454_v63 = vstv %s872_s0 }
  0x32   :  { %535 = vmatprep.subr.bf16.mxu0 %v753_v0  ;;  %551 = vmatprep.mubr.msk.bf16.mxu0 %vm754_vm0, %v753_v0  ;;  %v608_v3 = vld [vmem:[#allocation6 + $0x28] sm:$0xff]   ;;  %v615_v4 = vld [vmem:[#allocation8 + $0x38] sm:$0xff]   ;;  %v609_v5 = vld [vmem:[#allocation6 + $0x20] sm:$0xff]   ;;  %s755_s28 = smov [#allocation11]  }
  0x33   :  { %555 = vmatprep.subr.bf16.mxu1 %v753_v0  ;;  %571 = vmatprep.mubr.msk.bf16.mxu1 %vm754_vm0, %v753_v0  ;;  %v616_v6 = vld [vmem:[#allocation8 + $0x30] sm:$0xff]   ;;  %v610_v7 = vld [vmem:[#allocation6 + $0x18] sm:$0xff]   ;;  %v617_v8 = vld [vmem:[#allocation8 + $0x28] sm:$0xff]   ;;  %s466_s29 = sshll.u32 %s755_s28, 4  ;;  %s467_s29 = int_to_ptr.vmem [resolvable:$true] %s466_s29 }
  0x34   :  { %536 = vmatpush3.bf16.msra.mxu0 %v606_v1  ;;  %556 = vmatpush3.bf16.msra.mxu1 %v615_v4  ;;  %v611_v9 = vld [vmem:[#allocation6 + $0x10] sm:$0xff]   ;;  %v618_v10 = vld [vmem:[#allocation8 + $0x20] sm:$0xff]   ;;  %v612_v11 = vld [vmem:[#allocation6 + $0x8] sm:$0xff]   ;;  %s719_s30 = scalar_lea.vmem %s467_s29, 256  ;;  %p724_p7 = scmp.lt.s32.totalorder %s467_s29, %s467_s29 }
  0x35   :  { %537 = vmatprep.subr.bf16.mxu0 %v753_v0  ;;  %557 = vmatprep.subr.bf16.mxu1 %v753_v0  ;;  %v619_v12 = vld [vmem:[#allocation8 + $0x18] sm:$0xff]   ;;  %v613_v13 = vld [vmem:[#allocation6] sm:$0xff]   ;;  %v620_v15 = vld [vmem:[#allocation8 + $0x10] sm:$0xff]   ;;  %p720_p6 = scmp.ne.s32.totalorder %s467_s29, %s719_s30  ;;  %p725_p8 = scmp.lt.s32.totalorder %s719_s30, %s719_s30 }
  0x36   :  { %v614_v14 = vld [vmem:[#allocation3] sm:$0xff]   ;;  %v621_v16 = vld [vmem:[#allocation8 + $0x8] sm:$0xff]   ;;  %v622_v17 = vld [vmem:[#allocation8] sm:$0xff]  }
  0x37   :  { %v623_v18 = vld [vmem:[#allocation9 + $0x38] sm:$0xff]   ;;  %v624_v19 = vld [vmem:[#allocation9 + $0x30] sm:$0xff]   ;;  %v625_v20 = vld [vmem:[#allocation9 + $0x28] sm:$0xff]   ;;  %p726_p9 = por %p725_p8, %p724_p7 }
  0x38   :  { %538 = vmatpush3.bf16.msra.mxu0 %v607_v2  ;;  %558 = vmatpush3.bf16.msra.mxu1 %v616_v6  ;;  %v626_v21 = vld [vmem:[#allocation9 + $0x20] sm:$0xff]   ;;  %v627_v22 = vld [vmem:[#allocation9 + $0x18] sm:$0xff]   ;;  %v628_v33 = vld [vmem:[#allocation9 + $0x10] sm:$0xff]  }
  0x39   :  { %539 = vmatprep.subr.bf16.mxu0 %v753_v0  ;;  %559 = vmatprep.subr.bf16.mxu1 %v753_v0  ;;  %v480_v23 = vld [vmem:[%s875_s3] ss:$0 sm:$0xff]  ;;  %v629_v34 = vld [vmem:[#allocation9 + $0x8] sm:$0xff]   ;;  %v630_v35 = vld [vmem:[#allocation9] sm:$0xff]   ;;  %p727_p10 = pnand %p726_p9, %p720_p6 }
  0x3a   :  { %v490_v36 = vld [vmem:[%s877_s5] ss:$0 sm:$0xff] }
  0x3b   :  { %v499_v46 = vld [vmem:[%s879_s7] ss:$0 sm:$0xff] }
  0x3c   :  { %540 = vmatpush3.bf16.msra.mxu0 %v608_v3  ;;  %560 = vmatpush3.bf16.msra.mxu1 %v617_v8 }
  0x3d   :  { %541 = vmatprep.subr.bf16.mxu0 %v753_v0  ;;  %561 = vmatprep.subr.bf16.mxu1 %v753_v0 }
  0x40   :  { %542 = vmatpush3.bf16.msra.mxu0 %v609_v5  ;;  %562 = vmatpush3.bf16.msra.mxu1 %v618_v10 }
  0x41   :  { %543 = vmatprep.subr.bf16.mxu0 %v753_v0  ;;  %563 = vmatprep.subr.bf16.mxu1 %v753_v0 }
  0x44   :  { %544 = vmatpush3.bf16.msra.mxu0 %v610_v7  ;;  %564 = vmatpush3.bf16.msra.mxu1 %v619_v12 }
  0x45   :  { %545 = vmatprep.subr.bf16.mxu0 %v753_v0  ;;  %565 = vmatprep.subr.bf16.mxu1 %v753_v0 }
  0x48   :  { %546 = vmatpush3.bf16.msra.mxu0 %v611_v9  ;;  %566 = vmatpush3.bf16.msra.mxu1 %v620_v15 }
  0x49   :  { %547 = vmatprep.subr.bf16.mxu0 %v753_v0  ;;  %567 = vmatprep.subr.bf16.mxu1 %v753_v0 }
  0x4c   :  { %548 = vmatpush3.bf16.msra.mxu0 %v612_v11  ;;  %568 = vmatpush3.bf16.msra.mxu1 %v621_v16 }
  0x4d   :  { %549 = vmatprep.subr.bf16.mxu0 %v753_v0  ;;  %569 = vmatprep.subr.bf16.mxu1 %v753_v0 }
  0x50   :  { %550 = vmatpush3.bf16.msra.mxu0 %v613_v13  ;;  %570 = vmatpush3.bf16.msra.mxu1 %v622_v17 }
  0x51   :  { %575 = vmatprep.subr.bf16.mxu0 %v753_v0 }
  0x53   :  { %552 = vmatmul.mubr.bf16.vlgmr.msra.gmra.mxu0 %v614_v14 }
  0x54   :  { %591 = vmatprep.mubr.msk.bf16.mxu0 %vm754_vm0, %v753_v0  ;;  %576 = vmatpush3.bf16.msra.mxu0 %v623_v18 }
  0x55   :  { %577 = vmatprep.subr.bf16.mxu0 %v753_v0 }
  0x58   :  { %578 = vmatpush3.bf16.msra.mxu0 %v624_v19 }
  0x59   :  { %579 = vmatprep.subr.bf16.mxu0 %v753_v0 }
  0x5c   :  { %580 = vmatpush3.bf16.msra.mxu0 %v625_v20 }
  0x5d   :  { %581 = vmatprep.subr.bf16.mxu0 %v753_v0 }
  0x60   :  { %582 = vmatpush3.bf16.msra.mxu0 %v626_v21 }
  0x61   :  { %583 = vmatprep.subr.bf16.mxu0 %v753_v0 }
  0x64   :  { %584 = vmatpush3.bf16.msra.mxu0 %v627_v22 }
  0x65   :  { %585 = vmatprep.subr.bf16.mxu0 %v753_v0 }
  0x68   :  { %586 = vmatpush3.bf16.msra.mxu0 %v628_v33 }
  0x69   :  { %587 = vmatprep.subr.bf16.mxu0 %v753_v0 }
  0x6c   :  { %588 = vmatpush3.bf16.msra.mxu0 %v629_v34 }
  0x6d   :  { %589 = vmatprep.subr.bf16.mxu0 %v753_v0 }
  0x70   :  { %590 = vmatpush3.bf16.msra.mxu0 %v630_v35 }
 0x113   :  { %v200_v24 = vpop.f32.mrf.mxu0 }
 0x114   :  { %v201_v26 = vadd.f32 %v480_v23, %v200_v24 }
 0x115   :  { %v553_v25 = vpop.f32.mrf.mxu0 }
 0x116   :  { %v207_v30 = vmax.f32 %v201_v26, 0.0 }
 0x117   :  { %v203_v27 = vpop.f32.mrf.mxu0 }
 0x118   :  { %v204_v28 = vadd.f32 %v480_v23, %v203_v27 }
 0x119   :  { %v554_v29 = vpop.f32.mrf.mxu0 }
 0x11a   :  { %v208_v31 = vmax.f32 %v204_v28, 0.0 }
 0x11c   :  { %v209_v32 = vpack.c.bf16 %v208_v31, %v207_v30 }
 0x11e   :  { %572 = vmatmul.mubr.bf16.vlgmr.msra.gmra.mxu1 %v209_v32 }
 0x1de   :  { %v315_v37 = vpop.f32.mrf.mxu1 }
 0x1df   :  { %v316_v39 = vadd.f32 %v490_v36, %v315_v37 }
 0x1e0   :  { %v573_v38 = vpop.f32.mrf.mxu1 }
 0x1e1   :  { %v322_v43 = vmax.f32 %v316_v39, 0.0 }
 0x1e2   :  { %v318_v40 = vpop.f32.mrf.mxu1 }
 0x1e3   :  { %v319_v41 = vadd.f32 %v490_v36, %v318_v40 }
 0x1e4   :  { %v574_v42 = vpop.f32.mrf.mxu1 }
 0x1e5   :  { %v323_v44 = vmax.f32 %v319_v41, 0.0 }
 0x1e7   :  { %v324_v45 = vpack.c.bf16 %v323_v44, %v322_v43 }
 0x1e9   :  { %592 = vmatmul.mubr.bf16.vlgmr.msra.gmra.mxu0 %v324_v45 }
 0x2a9   :  { %v430_v47 = vpop.f32.mrf.mxu0 }
 0x2aa   :  { %v431_v48 = vadd.f32 %v499_v46, %v430_v47 }
 0x2ab   :  { %v593_v49 = vpop.f32.mrf.mxu0 }
 0x2ac   :  { %437 = vmax.xlane.f32.xlu0 %v431_v48 }
 0x2ad   :  { %v433_v50 = vpop.f32.mrf.mxu0 }
 0x2ae   :  { %v434_v51 = vadd.f32 %v499_v46, %v433_v50 }
 0x2af   :  { %v594_v52 = vpop.f32.mrf.mxu0 }
 0x2b0   :  { %439 = vmax.xlane.f32.xlu0 %v434_v51 }
 0x335   :  { %v438_v53 = vpop.xlane.xlu0 %437 }
 0x336   :  { %v441_v54 = vsub.f32 %v431_v48, %v438_v53 }
 0x338   :  { %v443_v55 = vmul.f32 1.442695, %v441_v54 }
 0x339   :  { %v440_v56 = vpop.xlane.xlu0 %439 }
 0x33a   :  { %631 = vpow2.f32 %v443_v55  ;;  %v442_v57 = vsub.f32 %v434_v51, %v440_v56 }
 0x33c   :  { %v445_v58 = vmul.f32 1.442695, %v442_v57 }
 0x33e   :  { %633 = vpow2.f32 %v445_v58 }
 0x347   :  { %v632_v59 = vpop.eup %631 }
 0x348   :  { %447 = vadd.xlane.f32.xlu1 %v632_v59 }
 0x34b   :  { %v634_v60 = vpop.eup %633 }
 0x34c   :  { %449 = vadd.xlane.f32.xlu1 %v634_v60 }
 0x3d1   :  { %v448_v61 = vpop.xlane.xlu1 %447 }
 0x3d2   :  { %635 = vrcp.f32 %v448_v61 }
 0x3d5   :  { %v450_v62 = vpop.xlane.xlu1 %449 }
 0x3d6   :  { %637 = vrcp.f32 %v450_v62 }
 0x3df   :  { %v636_v0 = vpop.eup %635 }
 0x3e0   :  { %v455_v1 = vmul.f32 %v636_v0, %v454_v63 }
 0x3e2   :  { %v457_v2 = vmul.f32 %v632_v59, %v455_v1 }
 0x3e3   :  { %v638_v3 = vpop.eup %637 }
 0x3e4   :  { %v456_v4 = vmul.f32 %v638_v3, %v454_v63  ;;  %459 = vst [vmem:[#allocation11] sm:$0xff] %v457_v2 }
 0x3e6   :  { %v458_v5 = vmul.f32 %v634_v60, %v456_v4 }
 0x3e8   :  { %460 = vst [vmem:[#allocation11 + $0x8] sm:$0xff] %v458_v5 }
 0x3e9   :  { %730 = shalt.err (!%p727_p10)
}
 0x3ea   :  { %s756_s9 = smov 128   ;;  %s757_s0 = smov 8  }
 0x3eb   :  { %472 = dma.vmem_to_hbm [thread:$0]  %s467_s29, 256, %s880_s8, [#allocation5], %s756_s9, %s756_s9, %s757_s0  }
 0x3ec   :  { %745 = dma.done.wait [#allocation5], 256  }
 0x3ed   :  { %746 = vsyncadd [#allocation5], 4294967040 }
 0x3ee   :  { %476 = vsyncpa [#allocation4], 1 }
 0x3ef   :  { %477 = vsyncpa [#allocation7], 1 }
 0x3f0   :  { %478 = vsyncpa [#allocation10], 1 }
 0x3f1   :  { %479 = vsyncpa [#allocation5], 1 }

// kernel: tpu_custom_call.1
= control target key start
LH: loop header
LB: loop body
LE: loop exit
PB: predicated region body
PF: predicated region fallthrough
CT: control target
= control target key end

     0   :  { %14 = vsyncpa [#allocation4], 0  ;;  %s872_s0 = inlined_call_operand.<no memory space> [shape: f32[1], index: 0, kind: input, shape index: {}]   ;;  %s873_s1 = inlined_call_operand.hbm [shape: bf16[16,128], index: 1, kind: input, shape index: {}]   ;;  %s874_s2 = inlined_call_operand.hbm [shape: bf16[128,128], index: 2, kind: input, shape index: {}]   ;;  %s875_s3 = inlined_call_operand.vmem [shape: f32[1,128], index: 3, kind: input, shape index: {}]   ;;  %s876_s4 = inlined_call_operand.hbm [shape: bf16[128,128], index: 4, kind: input, shape index: {}]   ;;  %s877_s5 = inlined_call_operand.vmem [shape: f32[1,128], index: 5, kind: input, shape index: {}]   ;;  %s878_s6 = inlined_call_operand.hbm [shape: bf16[128,128], index: 6, kind: input, shape index: {}]   ;;  %s879_s7 = inlined_call_operand.vmem [shape: f32[1,128], index: 7, kind: input, shape index: {}]   ;;  %s880_s8 = inlined_call_operand.hbm [shape: f32[16,128], index: 8, kind: output, shape index: {}]  }
   0x1   :  { %15 = vsyncpa [#allocation7], 0 }
   0x2   :  { %16 = vsyncpa [#allocation10], 0 }
   0x3   :  { %17 = vsyncpa [#allocation5], 0  ;;  %s747_s27 = smov [#allocation6]   ;;  %s748_s29 = smov [#allocation3]  }
   0x4   :  { %s37_s28 = sshll.u32 %s747_s27, 4  ;;  %s25_s30 = sshll.u32 %s748_s29, 4  ;;  %s38_s28 = int_to_ptr.vmem [resolvable:$true] %s37_s28  ;;  %s26_s30 = int_to_ptr.vmem [resolvable:$true] %s25_s30 }
   0x5   :  { %s647_s9 = scalar_lea.vmem %s38_s28, 1024  ;;  %p652_p1 = scmp.lt.s32.totalorder %s38_s28, %s38_s28 }
   0x6   :  { %p648_p0 = scmp.ne.s32.totalorder %s38_s28, %s647_s9  ;;  %p653_p2 = scmp.lt.s32.totalorder %s647_s9, %s647_s9 }
   0x8   :  { %p654_p3 = por %p653_p2, %p652_p1 }
   0xa   :  { %p655_p4 = pnand %p654_p3, %p648_p0 }
   0xc   :  { %658 = shalt.err (!%p655_p4)
}
   0xd   :  { %s749_s10 = smov 64   ;;  %s750_s11 = smov 4  }
   0xe   :  { %43 = dma.hbm_to_vmem [thread:$0]  %s874_s2, 1024, %s38_s28, [#allocation7], %s749_s10, %s749_s10, %s750_s11  }
   0xf   :  { %s667_s14 = scalar_lea.vmem %s26_s30, 128  ;;  %p672_p6 = scmp.lt.s32.totalorder %s26_s30, %s26_s30 }
  0x10   :  { %p668_p5 = scmp.ne.s32.totalorder %s26_s30, %s667_s14  ;;  %p673_p7 = scmp.lt.s32.totalorder %s667_s14, %s667_s14 }
  0x12   :  { %p674_p8 = por %p673_p7, %p672_p6 }
  0x14   :  { %p675_p9 = pnand %p674_p8, %p668_p5 }
  0x16   :  { %678 = shalt.err (!%p675_p9)
}
  0x17   :  { %31 = dma.hbm_to_vmem [thread:$0]  %s873_s1, 128, %s26_s30, [#allocation4], %s749_s10, %s749_s10, %s750_s11  }
  0x18   :  { %s751_s17 = smov [#allocation8]   ;;  %s752_s19 = smov [#allocation9]  }
  0x19   :  { %s51_s18 = sshll.u32 %s751_s17, 4  ;;  %s65_s20 = sshll.u32 %s752_s19, 4  ;;  %s52_s18 = int_to_ptr.vmem [resolvable:$true] %s51_s18  ;;  %s66_s20 = int_to_ptr.vmem [resolvable:$true] %s65_s20 }
  0x1a   :  { %s687_s2 = scalar_lea.vmem %s52_s18, 1024  ;;  %p692_p11 = scmp.lt.s32.totalorder %s52_s18, %s52_s18 }
  0x1b   :  { %p688_p10 = scmp.ne.s32.totalorder %s52_s18, %s687_s2  ;;  %p693_p12 = scmp.lt.s32.totalorder %s687_s2, %s687_s2 }
  0x1d   :  { %p694_p13 = por %p693_p12, %p692_p11 }
  0x1f   :  { %p695_p0 = pnand %p694_p13, %p688_p10 }
  0x21   :  { %698 = shalt.err (!%p695_p0)
}
  0x22   :  { %57 = dma.hbm_to_vmem [thread:$0]  %s876_s4, 1024, %s52_s18, [#allocation7], %s749_s10, %s749_s10, %s750_s11  }
  0x23   :  { %s707_s1 = scalar_lea.vmem %s66_s20, 1024  ;;  %p712_p2 = scmp.lt.s32.totalorder %s66_s20, %s66_s20 }
  0x24   :  { %p708_p1 = scmp.ne.s32.totalorder %s66_s20, %s707_s1  ;;  %p713_p3 = scmp.lt.s32.totalorder %s707_s1, %s707_s1 }
  0x26   :  { %p714_p4 = por %p713_p3, %p712_p2 }
  0x28   :  { %p715_p5 = pnand %p714_p4, %p708_p1 }
  0x2a   :  { %718 = shalt.err (!%p715_p5)
}
  0x2b   :  { %71 = dma.hbm_to_vmem [thread:$0]  %s878_s6, 1024, %s66_s20, [#allocation10], %s749_s10, %s749_s10, %s750_s11  }
  0x2c   :  { %739 = dma.done.wait [#allocation4], 128  }
  0x2d   :  { %740 = vsyncadd [#allocation4], 4294967168 }
  0x2e   :  { %741 = dma.done.wait [#allocation7], 2048  }
  0x2f   :  { %742 = vsyncadd [#allocation7], 4294965248 }
  0x30   :  { %743 = dma.done.wait [#allocation10], 1024  }
  0x31   :  { %744 = vsyncadd [#allocation10], 4294966272  ;;  %v753_v0 = vmov 0.0   ;;  %vm754_vm0 = vmmov 0   ;;  %v606_v1 = vld [vmem:[#allocation6 + $0x38] sm:$0xff]   ;;  %v607_v2 = vld [vmem:[#allocation6 + $0x30] sm:$0xff]   ;;  %v454_v63 = vstv %s872_s0 }
  0x32   :  { %535 = vmatprep.subr.bf16.mxu0 %v753_v0  ;;  %551 = vmatprep.mubr.msk.bf16.mxu0 %vm754_vm0, %v753_v0  ;;  %v608_v3 = vld [vmem:[#allocation6 + $0x28] sm:$0xff]   ;;  %v615_v4 = vld [vmem:[#allocation8 + $0x38] sm:$0xff]   ;;  %v609_v5 = vld [vmem:[#allocation6 + $0x20] sm:$0xff]   ;;  %s755_s28 = smov [#allocation11]  }
  0x33   :  { %555 = vmatprep.subr.bf16.mxu1 %v753_v0  ;;  %571 = vmatprep.mubr.msk.bf16.mxu1 %vm754_vm0, %v753_v0  ;;  %v616_v6 = vld [vmem:[#allocation8 + $0x30] sm:$0xff]   ;;  %v610_v7 = vld [vmem:[#allocation6 + $0x18] sm:$0xff]   ;;  %v617_v8 = vld [vmem:[#allocation8 + $0x28] sm:$0xff]   ;;  %s466_s29 = sshll.u32 %s755_s28, 4  ;;  %s467_s29 = int_to_ptr.vmem [resolvable:$true] %s466_s29 }
  0x34   :  { %536 = vmatpush3.bf16.msra.mxu0 %v606_v1  ;;  %556 = vmatpush3.bf16.msra.mxu1 %v615_v4  ;;  %v611_v9 = vld [vmem:[#allocation6 + $0x10] sm:$0xff]   ;;  %v618_v10 = vld [vmem:[#allocation8 + $0x20] sm:$0xff]   ;;  %v612_v11 = vld [vmem:[#allocation6 + $0x8] sm:$0xff]   ;;  %s719_s30 = scalar_lea.vmem %s467_s29, 256  ;;  %p724_p7 = scmp.lt.s32.totalorder %s467_s29, %s467_s29 }
  0x35   :  { %537 = vmatprep.subr.bf16.mxu0 %v753_v0  ;;  %557 = vmatprep.subr.bf16.mxu1 %v753_v0  ;;  %v619_v12 = vld [vmem:[#allocation8 + $0x18] sm:$0xff]   ;;  %v613_v13 = vld [vmem:[#allocation6] sm:$0xff]   ;;  %v620_v15 = vld [vmem:[#allocation8 + $0x10] sm:$0xff]   ;;  %p720_p6 = scmp.ne.s32.totalorder %s467_s29, %s719_s30  ;;  %p725_p8 = scmp.lt.s32.totalorder %s719_s30, %s719_s30 }
  0x36   :  { %v614_v14 = vld [vmem:[#allocation3] sm:$0xff]   ;;  %v621_v16 = vld [vmem:[#allocation8 + $0x8] sm:$0xff]   ;;  %v622_v17 = vld [vmem:[#allocation8] sm:$0xff]  }
  0x37   :  { %v623_v18 = vld [vmem:[#allocation9 + $0x38] sm:$0xff]   ;;  %v624_v19 = vld [vmem:[#allocation9 + $0x30] sm:$0xff]   ;;  %v625_v20 = vld [vmem:[#allocation9 + $0x28] sm:$0xff]   ;;  %p726_p9 = por %p725_p8, %p724_p7 }
  0x38   :  { %538 = vmatpush3.bf16.msra.mxu0 %v607_v2  ;;  %558 = vmatpush3.bf16.msra.mxu1 %v616_v6  ;;  %v626_v21 = vld [vmem:[#allocation9 + $0x20] sm:$0xff]   ;;  %v627_v22 = vld [vmem:[#allocation9 + $0x18] sm:$0xff]   ;;  %v628_v33 = vld [vmem:[#allocation9 + $0x10] sm:$0xff]  }
  0x39   :  { %539 = vmatprep.subr.bf16.mxu0 %v753_v0  ;;  %559 = vmatprep.subr.bf16.mxu1 %v753_v0  ;;  %v480_v23 = vld [vmem:[%s875_s3] ss:$0 sm:$0xff]  ;;  %v629_v34 = vld [vmem:[#allocation9 + $0x8] sm:$0xff]   ;;  %v630_v35 = vld [vmem:[#allocation9] sm:$0xff]   ;;  %p727_p10 = pnand %p726_p9, %p720_p6 }
  0x3a   :  { %v490_v36 = vld [vmem:[%s877_s5] ss:$0 sm:$0xff] }
  0x3b   :  { %v499_v46 = vld [vmem:[%s879_s7] ss:$0 sm:$0xff] }
  0x3c   :  { %540 = vmatpush3.bf16.msra.mxu0 %v608_v3  ;;  %560 = vmatpush3.bf16.msra.mxu1 %v617_v8 }
  0x3d   :  { %541 = vmatprep.subr.bf16.mxu0 %v753_v0  ;;  %561 = vmatprep.subr.bf16.mxu1 %v753_v0 }
  0x40   :  { %542 = vmatpush3.bf16.msra.mxu0 %v609_v5  ;;  %562 = vmatpush3.bf16.msra.mxu1 %v618_v10 }
  0x41   :  { %543 = vmatprep.subr.bf16.mxu0 %v753_v0  ;;  %563 = vmatprep.subr.bf16.mxu1 %v753_v0 }
  0x44   :  { %544 = vmatpush3.bf16.msra.mxu0 %v610_v7  ;;  %564 = vmatpush3.bf16.msra.mxu1 %v619_v12 }
  0x45   :  { %545 = vmatprep.subr.bf16.mxu0 %v753_v0  ;;  %565 = vmatprep.subr.bf16.mxu1 %v753_v0 }
  0x48   :  { %546 = vmatpush3.bf16.msra.mxu0 %v611_v9  ;;  %566 = vmatpush3.bf16.msra.mxu1 %v620_v15 }
  0x49   :  { %547 = vmatprep.subr.bf16.mxu0 %v753_v0  ;;  %567 = vmatprep.subr.bf16.mxu1 %v753_v0 }
  0x4c   :  { %548 = vmatpush3.bf16.msra.mxu0 %v612_v11  ;;  %568 = vmatpush3.bf16.msra.mxu1 %v621_v16 }
  0x4d   :  { %549 = vmatprep.subr.bf16.mxu0 %v753_v0  ;;  %569 = vmatprep.subr.bf16.mxu1 %v753_v0 }
  0x50   :  { %550 = vmatpush3.bf16.msra.mxu0 %v613_v13  ;;  %570 = vmatpush3.bf16.msra.mxu1 %v622_v17 }
  0x51   :  { %575 = vmatprep.subr.bf16.mxu0 %v753_v0 }
  0x53   :  { %552 = vmatmul.mubr.bf16.vlgmr.msra.gmra.mxu0 %v614_v14 }
  0x54   :  { %591 = vmatprep.mubr.msk.bf16.mxu0 %vm754_vm0, %v753_v0  ;;  %576 = vmatpush3.bf16.msra.mxu0 %v623_v18 }
  0x55   :  { %577 = vmatprep.subr.bf16.mxu0 %v753_v0 }
  0x58   :  { %578 = vmatpush3.bf16.msra.mxu0 %v624_v19 }
  0x59   :  { %579 = vmatprep.subr.bf16.mxu0 %v753_v0 }
  0x5c   :  { %580 = vmatpush3.bf16.msra.mxu0 %v625_v20 }
  0x5d   :  { %581 = vmatprep.subr.bf16.mxu0 %v753_v0 }
  0x60   :  { %582 = vmatpush3.bf16.msra.mxu0 %v626_v21 }
  0x61   :  { %583 = vmatprep.subr.bf16.mxu0 %v753_v0 }
  0x64   :  { %584 = vmatpush3.bf16.msra.mxu0 %v627_v22 }
  0x65   :  { %585 = vmatprep.subr.bf16.mxu0 %v753_v0 }
  0x68   :  { %586 = vmatpush3.bf16.msra.mxu0 %v628_v33 }
  0x69   :  { %587 = vmatprep.subr.bf16.mxu0 %v753_v0 }
  0x6c   :  { %588 = vmatpush3.bf16.msra.mxu0 %v629_v34 }
  0x6d   :  { %589 = vmatprep.subr.bf16.mxu0 %v753_v0 }
  0x70   :  { %590 = vmatpush3.bf16.msra.mxu0 %v630_v35 }
 0x113   :  { %v200_v24 = vpop.f32.mrf.mxu0 }
 0x114   :  { %v201_v26 = vadd.f32 %v480_v23, %v200_v24 }
 0x115   :  { %v553_v25 = vpop.f32.mrf.mxu0 }
 0x116   :  { %v207_v30 = vmax.f32 %v201_v26, 0.0 }
 0x117   :  { %v203_v27 = vpop.f32.mrf.mxu0 }
 0x118   :  { %v204_v28 = vadd.f32 %v480_v23, %v203_v27 }
 0x119   :  { %v554_v29 = vpop.f32.mrf.mxu0 }
 0x11a   :  { %v208_v31 = vmax.f32 %v204_v28, 0.0 }
 0x11c   :  { %v209_v32 = vpack.c.bf16 %v208_v31, %v207_v30 }
 0x11e   :  { %572 = vmatmul.mubr.bf16.vlgmr.msra.gmra.mxu1 %v209_v32 }
 0x1de   :  { %v315_v37 = vpop.f32.mrf.mxu1 }
 0x1df   :  { %v316_v39 = vadd.f32 %v490_v36, %v315_v37 }
 0x1e0   :  { %v573_v38 = vpop.f32.mrf.mxu1 }
 0x1e1   :  { %v322_v43 = vmax.f32 %v316_v39, 0.0 }
 0x1e2   :  { %v318_v40 = vpop.f32.mrf.mxu1 }
 0x1e3   :  { %v319_v41 = vadd.f32 %v490_v36, %v318_v40 }
 0x1e4   :  { %v574_v42 = vpop.f32.mrf.mxu1 }
 0x1e5   :  { %v323_v44 = vmax.f32 %v319_v41, 0.0 }
 0x1e7   :  { %v324_v45 = vpack.c.bf16 %v323_v44, %v322_v43 }
 0x1e9   :  { %592 = vmatmul.mubr.bf16.vlgmr.msra.gmra.mxu0 %v324_v45 }
 0x2a9   :  { %v430_v47 = vpop.f32.mrf.mxu0 }
 0x2aa   :  { %v431_v48 = vadd.f32 %v499_v46, %v430_v47 }
 0x2ab   :  { %v593_v49 = vpop.f32.mrf.mxu0 }
 0x2ac   :  { %437 = vmax.xlane.f32.xlu0 %v431_v48 }
 0x2ad   :  { %v433_v50 = vpop.f32.mrf.mxu0 }
 0x2ae   :  { %v434_v51 = vadd.f32 %v499_v46, %v433_v50 }
 0x2af   :  { %v594_v52 = vpop.f32.mrf.mxu0 }
 0x2b0   :  { %439 = vmax.xlane.f32.xlu0 %v434_v51 }
 0x335   :  { %v438_v53 = vpop.xlane.xlu0 %437 }
 0x336   :  { %v441_v54 = vsub.f32 %v431_v48, %v438_v53 }
 0x338   :  { %v443_v55 = vmul.f32 1.442695, %v441_v54 }
 0x339   :  { %v440_v56 = vpop.xlane.xlu0 %439 }
 0x33a   :  { %631 = vpow2.f32 %v443_v55  ;;  %v442_v57 = vsub.f32 %v434_v51, %v440_v56 }
 0x33c   :  { %v445_v58 = vmul.f32 1.442695, %v442_v57 }
 0x33e   :  { %633 = vpow2.f32 %v445_v58 }
 0x347   :  { %v632_v59 = vpop.eup %631 }
 0x348   :  { %447 = vadd.xlane.f32.xlu1 %v632_v59 }
 0x34b   :  { %v634_v60 = vpop.eup %633 }
 0x34c   :  { %449 = vadd.xlane.f32.xlu1 %v634_v60 }
 0x3d1   :  { %v448_v61 = vpop.xlane.xlu1 %447 }
 0x3d2   :  { %635 = vrcp.f32 %v448_v61 }
 0x3d5   :  { %v450_v62 = vpop.xlane.xlu1 %449 }
 0x3d6   :  { %637 = vrcp.f32 %v450_v62 }
 0x3df   :  { %v636_v0 = vpop.eup %635 }
 0x3e0   :  { %v455_v1 = vmul.f32 %v636_v0, %v454_v63 }
 0x3e2   :  { %v457_v2 = vmul.f32 %v632_v59, %v455_v1 }
 0x3e3   :  { %v638_v3 = vpop.eup %637 }
 0x3e4   :  { %v456_v4 = vmul.f32 %v638_v3, %v454_v63  ;;  %459 = vst [vmem:[#allocation11] sm:$0xff] %v457_v2 }
 0x3e6   :  { %v458_v5 = vmul.f32 %v634_v60, %v456_v4 }
 0x3e8   :  { %460 = vst [vmem:[#allocation11 + $0x8] sm:$0xff] %v458_v5 }
 0x3e9   :  { %730 = shalt.err (!%p727_p10)
}
 0x3ea   :  { %s756_s9 = smov 128   ;;  %s757_s0 = smov 8  }
 0x3eb   :  { %472 = dma.vmem_to_hbm [thread:$0]  %s467_s29, 256, %s880_s8, [#allocation5], %s756_s9, %s756_s9, %s757_s0  }
 0x3ec   :  { %745 = dma.done.wait [#allocation5], 256  }
 0x3ed   :  { %746 = vsyncadd [#allocation5], 4294967040 }
 0x3ee   :  { %476 = vsyncpa [#allocation4], 1 }
 0x3ef   :  { %477 = vsyncpa [#allocation7], 1 }
 0x3f0   :  { %478 = vsyncpa [#allocation10], 1 }
 0x3f1   :  { %479 = vsyncpa [#allocation5], 1 }

</bundles_post_ra>
